<compile_context>
chip_gen: v5e
topology: v5e:2x2
jax: 0.10.0
libtpu: 0.0.40
codegen_flags: <defaults>
</compile_context>

<pallas_src>
import jax
import jax.numpy as jnp
import numpy as np
from jax.experimental import pallas as pl
from jax.experimental.pallas import tpu as pltpu

_EPS = 1e-5


# ----------------------------------------------------------------------------------
# Pallas kernel: fused (deconv -> BN -> ReLU) x 3, one batch image per grid step.
# ----------------------------------------------------------------------------------
def _fused_deconv3_kernel(x_ref, b1, s1, c1, b2, s2, c2, b3, s3, c3, o_ref):
    # x_ref : (1, H, W*C1)        bf16  lane-dense input image
    # bK    : (3, W*Cin_k, W*C2)  bf16  banded conv weights (one slab per kernel row dy)
    # sK/cK : (1, W*C2)           f32   fused BN scale / bias (tiled over W)
    # o_ref : (1, H, W*C2)        f32
    H = x_ref.shape[1]

    def layer(a, b_ref, s_ref, c_ref):
        # a: (H, W*Cin) f32 activation for this layer.
        zrow = jnp.zeros((1, a.shape[1]), jnp.float32)
        ap = jnp.concatenate([zrow, a, zrow], axis=0)            # in-kernel H zero padding
        acc = jnp.zeros((H, b_ref.shape[2]), jnp.float32)
        for dy in range(3):                                      # 3 big-K MXU matmuls
            acc = acc + jnp.dot(
                ap[dy:dy + H, :].astype(jnp.bfloat16),
                b_ref[dy],
                preferred_element_type=jnp.float32,
            )
        return jnp.maximum(acc * s_ref[...] + c_ref[...], 0.0)   # f32 affine + ReLU

    a = x_ref[0].astype(jnp.float32)
    for b_ref, s_ref, c_ref in ((b1, s1, c1), (b2, s2, c2), (b3, s3, c3)):
        a = layer(a, b_ref, s_ref, c_ref)
    o_ref[0] = a.astype(o_ref.dtype)


# ----------------------------------------------------------------------------------
# Parameter preprocessing (wrapper side, traced once under jit).
# ----------------------------------------------------------------------------------
def _equiv_conv_kernel(wt):
    """ConvTranspose2d(3,1,1) weight (Cin,Cout,3,3) -> equivalent SAME-conv taps (3,3,Cin,Cout)."""
    return jnp.transpose(wt[:, :, ::-1, ::-1], (2, 3, 0, 1))


def _banded_weights(wt, W):
    """Banded matrices B[dy] of shape (W*Cin, W*Cout).

    B[dy][w_in*Cin + ci, w*Cout + co] = K[dy, w_in - w + 1, ci, co] when |w_in - w| <= 1,
    else 0 — i.e. the W-direction SAME zero padding is folded into the band structure.
    """
    K = _equiv_conv_kernel(wt)                      # (3, 3, Cin, Cout)
    Cin, Cout = wt.shape[0], wt.shape[1]
    slabs = []
    for dy in range(3):
        D = jnp.zeros((W, Cin, W, Cout), K.dtype)
        for dx in range(3):
            w = np.arange(max(0, 1 - dx), min(W, W + 1 - dx))
            w_in = w + dx - 1
            D = D.at[w_in, :, w, :].set(
                jnp.broadcast_to(K[dy, dx], (len(w), Cin, Cout)))
        slabs.append(D.reshape(W * Cin, W * Cout))
    return jnp.stack(slabs, axis=0)                 # (3, W*Cin, W*Cout)


def _fold_bn(p):
    scale = p["gamma"] / jnp.sqrt(p["var"] + _EPS)          # (Cout,)
    bias = p["beta"] + scale * (p["conv_b"] - p["mean"])    # (Cout,)  folds the conv bias
    return scale, bias


# ----------------------------------------------------------------------------------
# Forward (NCHW in / NCHW out, matching the PyTorch module interface).
# ----------------------------------------------------------------------------------
@jax.jit
def create_deconv_3_in_forward(x_nchw, params):
    N, C1, H, W = x_nchw.shape
    C2 = params[0]["wt"].shape[1]

    # NCHW -> lane-dense (N, H, W*C1); bf16 halves the input DMA.
    x = jnp.transpose(x_nchw, (0, 2, 3, 1)).reshape(N, H, W * C1).astype(jnp.bfloat16)

    ins = [x]
    in_specs = [pl.BlockSpec((1, H, W * C1), lambda n: (n, 0, 0))]
    for p in params:
        B = _banded_weights(p["wt"], W).astype(jnp.bfloat16)     # (3, W*Cin, W*C2)
        scale, bias = _fold_bn(p)
        s = jnp.tile(scale, W).reshape(1, W * C2).astype(jnp.float32)
        c = jnp.tile(bias, W).reshape(1, W * C2).astype(jnp.float32)
        ins += [B, s, c]
        in_specs += [
            pl.BlockSpec(B.shape, lambda n: (0, 0, 0)),          # weights stay resident
            pl.BlockSpec(s.shape, lambda n: (0, 0)),
            pl.BlockSpec(c.shape, lambda n: (0, 0)),
        ]

    out = pl.pallas_call(
        _fused_deconv3_kernel,
        out_shape=jax.ShapeDtypeStruct((N, H, W * C2), jnp.float32),
        grid=(N,),
        in_specs=in_specs,
        out_specs=pl.BlockSpec((1, H, W * C2), lambda n: (n, 0, 0)),
        compiler_params=pltpu.CompilerParams(dimension_semantics=("parallel",)),
    )(*ins)

    # (N, H, W*C2) -> NCHW
    return jnp.transpose(out.reshape(N, H, W, C2), (0, 3, 1, 2))


# ----------------------------------------------------------------------------------
# Deterministic synthetic parameters for the 3 (deconv + BN) blocks.
# ----------------------------------------------------------------------------------
def init_params(key, c1, c2):
    chans = [(c1, c2), (c2, c2), (c2, c2)]
    params = []
    for li, (cin, cout) in enumerate(chans):
        k = jax.random.fold_in(key, li)
        kw, kb, kg, kbe, km, kv = jax.random.split(k, 6)
        fan = cin * 9
        params.append(dict(
            wt=jax.random.normal(kw, (cin, cout, 3, 3), jnp.float32) / np.sqrt(fan),
            conv_b=jax.random.normal(kb, (cout,), jnp.float32) * 0.1,
            gamma=1.0 + 0.1 * jax.random.normal(kg, (cout,), jnp.float32),
            beta=0.1 * jax.random.normal(kbe, (cout,), jnp.float32),
            mean=0.1 * jax.random.normal(km, (cout,), jnp.float32),
            var=jnp.abs(jax.random.normal(kv, (cout,), jnp.float32)) + 0.5,
        ))
    return params


# ----------------------------------------------------------------------------------
# Pure-JAX (XLA conv) reference, matched to the kernel's bf16-operand / f32-accum precision.
# ----------------------------------------------------------------------------------
def _ref_layer(x_nhwc, p):
    K = _equiv_conv_kernel(p["wt"])                          # (3,3,Cin,Cout) HWIO
    conv = jax.lax.conv_general_dilated(
        x_nhwc.astype(jnp.bfloat16), K.astype(jnp.bfloat16),
        window_strides=(1, 1), padding="SAME",
        dimension_numbers=("NHWC", "HWIO", "NHWC"),
        preferred_element_type=jnp.float32)
    scale, bias = _fold_bn(p)
    return jnp.maximum(conv * scale + bias, 0.0)


def _ref_forward(x_nchw, params):
    x = jnp.transpose(x_nchw, (0, 2, 3, 1))
    for p in params:
        x = _ref_layer(x, p)
    return jnp.transpose(x, (0, 3, 1, 2))


if __name__ == "__main__":
    key = jax.random.PRNGKey(0)
    kx, kp = jax.random.split(key)

    N, C1, C2, H, W = 2, 4, 8, 16, 16
    x = jax.random.normal(kx, (N, C1, H, W), jnp.float32)
    params = init_params(kp, C1, C2)

    out = jax.block_until_ready(create_deconv_3_in_forward(x, params))
    assert out.shape == (N, C2, H, W), out.shape

    ref = jax.block_until_ready(_ref_forward(x, params))
    np.testing.assert_allclose(np.asarray(out), np.asarray(ref), rtol=5e-3, atol=5e-3)

    print("KERNEL_OK")
</pallas_src>

<mosaic_0001>
module attributes {stable_mosaic.version = 11 : i64} {
  func.func @_fused_deconv3_kernel(%arg0: i32, %arg1: memref<1x16x64xbf16, #tpu.memory_space<vmem>>, %arg2: memref<3x64x128xbf16, #tpu.memory_space<vmem>>, %arg3: memref<1x128xf32, #tpu.memory_space<vmem>>, %arg4: memref<1x128xf32, #tpu.memory_space<vmem>>, %arg5: memref<3x128x128xbf16, #tpu.memory_space<vmem>>, %arg6: memref<1x128xf32, #tpu.memory_space<vmem>>, %arg7: memref<1x128xf32, #tpu.memory_space<vmem>>, %arg8: memref<3x128x128xbf16, #tpu.memory_space<vmem>>, %arg9: memref<1x128xf32, #tpu.memory_space<vmem>>, %arg10: memref<1x128xf32, #tpu.memory_space<vmem>>, %arg11: memref<1x16x128xf32, #tpu.memory_space<vmem>>) attributes {dimension_semantics = [#tpu.dimension_semantics<parallel>], iteration_bounds = array<i64: 2>, scalar_prefetch = 0 : i64, scratch_operands = 0 : i64, tpu.core_type = #tpu.core_type<tc>, window_params = [{transform_indices = @transform_0, window_bounds = array<i64: 1, 16, 64>}, {pipeline_mode = #tpu.pipeline_mode<synchronous>, transform_indices = @transform_1, window_bounds = array<i64: 3, 64, 128>}, {pipeline_mode = #tpu.pipeline_mode<synchronous>, transform_indices = @transform_2, window_bounds = array<i64: 1, 128>}, {pipeline_mode = #tpu.pipeline_mode<synchronous>, transform_indices = @transform_3, window_bounds = array<i64: 1, 128>}, {pipeline_mode = #tpu.pipeline_mode<synchronous>, transform_indices = @transform_4, window_bounds = array<i64: 3, 128, 128>}, {pipeline_mode = #tpu.pipeline_mode<synchronous>, transform_indices = @transform_5, window_bounds = array<i64: 1, 128>}, {pipeline_mode = #tpu.pipeline_mode<synchronous>, transform_indices = @transform_6, window_bounds = array<i64: 1, 128>}, {pipeline_mode = #tpu.pipeline_mode<synchronous>, transform_indices = @transform_7, window_bounds = array<i64: 3, 128, 128>}, {pipeline_mode = #tpu.pipeline_mode<synchronous>, transform_indices = @transform_8, window_bounds = array<i64: 1, 128>}, {pipeline_mode = #tpu.pipeline_mode<synchronous>, transform_indices = @transform_9, window_bounds = array<i64: 1, 128>}, {transform_indices = @transform_10, window_bounds = array<i64: 1, 16, 128>}]} {
    %c0 = arith.constant 0 : index
    %c0_0 = arith.constant 0 : index
    %c0_1 = arith.constant 0 : index
    %0 = vector.load %arg1[%c0, %c0_0, %c0_1] : memref<1x16x64xbf16, #tpu.memory_space<vmem>>, vector<1x16x64xbf16>
    %1 = vector.shape_cast %0 : vector<1x16x64xbf16> to vector<16x64xbf16>
    %2 = arith.extf %1 : vector<16x64xbf16> to vector<16x64xf32>
    %cst = arith.constant 0.000000e+00 : f32
    %3 = vector.broadcast %cst : f32 to vector<1x64xf32>
    %4 = tpu.concatenate %3, %2, %3 in 0 : vector<1x64xf32>, vector<16x64xf32>, vector<1x64xf32> -> vector<18x64xf32>
    %cst_2 = arith.constant 0.000000e+00 : f32
    %5 = vector.broadcast %cst_2 : f32 to vector<16x128xf32>
    %6 = vector.extract_strided_slice %4 {offsets = [0, 0], sizes = [16, 64], strides = [1, 1]} : vector<18x64xf32> to vector<16x64xf32>
    %7 = arith.truncf %6 : vector<16x64xf32> to vector<16x64xbf16>
    %c0_3 = arith.constant 0 : index
    %c0_4 = arith.constant 0 : index
    %c0_5 = arith.constant 0 : index
    %8 = vector.load %arg2[%c0_3, %c0_4, %c0_5] : memref<3x64x128xbf16, #tpu.memory_space<vmem>>, vector<1x64x128xbf16>
    %9 = vector.shape_cast %8 : vector<1x64x128xbf16> to vector<64x128xbf16>
    %cst_6 = arith.constant dense<0.000000e+00> : vector<16x128xf32>
    %10 = tpu.matmul %7, %9, %cst_6 {dimension_numbers = #tpu.dot_dimension_numbers<[1], [0], [0], [1], [0, 0, 1, 1], [], []>} : vector<16x64xbf16>, vector<64x128xbf16>, vector<16x128xf32> -> vector<16x128xf32>
    %11 = arith.addf %5, %10 : vector<16x128xf32>
    %12 = vector.extract_strided_slice %4 {offsets = [1, 0], sizes = [16, 64], strides = [1, 1]} : vector<18x64xf32> to vector<16x64xf32>
    %13 = arith.truncf %12 : vector<16x64xf32> to vector<16x64xbf16>
    %c1 = arith.constant 1 : index
    %c0_7 = arith.constant 0 : index
    %c0_8 = arith.constant 0 : index
    %14 = vector.load %arg2[%c1, %c0_7, %c0_8] : memref<3x64x128xbf16, #tpu.memory_space<vmem>>, vector<1x64x128xbf16>
    %15 = vector.shape_cast %14 : vector<1x64x128xbf16> to vector<64x128xbf16>
    %cst_9 = arith.constant dense<0.000000e+00> : vector<16x128xf32>
    %16 = tpu.matmul %13, %15, %cst_9 {dimension_numbers = #tpu.dot_dimension_numbers<[1], [0], [0], [1], [0, 0, 1, 1], [], []>} : vector<16x64xbf16>, vector<64x128xbf16>, vector<16x128xf32> -> vector<16x128xf32>
    %17 = arith.addf %11, %16 : vector<16x128xf32>
    %18 = vector.extract_strided_slice %4 {offsets = [2, 0], sizes = [16, 64], strides = [1, 1]} : vector<18x64xf32> to vector<16x64xf32>
    %19 = arith.truncf %18 : vector<16x64xf32> to vector<16x64xbf16>
    %c2 = arith.constant 2 : index
    %c0_10 = arith.constant 0 : index
    %c0_11 = arith.constant 0 : index
    %20 = vector.load %arg2[%c2, %c0_10, %c0_11] : memref<3x64x128xbf16, #tpu.memory_space<vmem>>, vector<1x64x128xbf16>
    %21 = vector.shape_cast %20 : vector<1x64x128xbf16> to vector<64x128xbf16>
    %cst_12 = arith.constant dense<0.000000e+00> : vector<16x128xf32>
    %22 = tpu.matmul %19, %21, %cst_12 {dimension_numbers = #tpu.dot_dimension_numbers<[1], [0], [0], [1], [0, 0, 1, 1], [], []>} : vector<16x64xbf16>, vector<64x128xbf16>, vector<16x128xf32> -> vector<16x128xf32>
    %23 = arith.addf %17, %22 : vector<16x128xf32>
    %c0_13 = arith.constant 0 : index
    %c0_14 = arith.constant 0 : index
    %24 = vector.load %arg3[%c0_13, %c0_14] : memref<1x128xf32, #tpu.memory_space<vmem>>, vector<1x128xf32>
    %25 = vector.broadcast %24 : vector<1x128xf32> to vector<16x128xf32>
    %26 = arith.mulf %23, %25 : vector<16x128xf32>
    %c0_15 = arith.constant 0 : index
    %c0_16 = arith.constant 0 : index
    %27 = vector.load %arg4[%c0_15, %c0_16] : memref<1x128xf32, #tpu.memory_space<vmem>>, vector<1x128xf32>
    %28 = vector.broadcast %27 : vector<1x128xf32> to vector<16x128xf32>
    %29 = arith.addf %26, %28 : vector<16x128xf32>
    %cst_17 = arith.constant 0.000000e+00 : f32
    %30 = vector.broadcast %cst_17 : f32 to vector<16x128xf32>
    %31 = arith.maximumf %29, %30 : vector<16x128xf32>
    %cst_18 = arith.constant 0.000000e+00 : f32
    %32 = vector.broadcast %cst_18 : f32 to vector<1x128xf32>
    %33 = tpu.concatenate %32, %31, %32 in 0 : vector<1x128xf32>, vector<16x128xf32>, vector<1x128xf32> -> vector<18x128xf32>
    %cst_19 = arith.constant 0.000000e+00 : f32
    %34 = vector.broadcast %cst_19 : f32 to vector<16x128xf32>
    %35 = vector.extract_strided_slice %33 {offsets = [0, 0], sizes = [16, 128], strides = [1, 1]} : vector<18x128xf32> to vector<16x128xf32>
    %36 = arith.truncf %35 : vector<16x128xf32> to vector<16x128xbf16>
    %c0_20 = arith.constant 0 : index
    %c0_21 = arith.constant 0 : index
    %c0_22 = arith.constant 0 : index
    %37 = vector.load %arg5[%c0_20, %c0_21, %c0_22] : memref<3x128x128xbf16, #tpu.memory_space<vmem>>, vector<1x128x128xbf16>
    %38 = vector.shape_cast %37 : vector<1x128x128xbf16> to vector<128x128xbf16>
    %cst_23 = arith.constant dense<0.000000e+00> : vector<16x128xf32>
    %39 = tpu.matmul %36, %38, %cst_23 {dimension_numbers = #tpu.dot_dimension_numbers<[1], [0], [0], [1], [0, 0, 1, 1], [], []>} : vector<16x128xbf16>, vector<128x128xbf16>, vector<16x128xf32> -> vector<16x128xf32>
    %40 = arith.addf %34, %39 : vector<16x128xf32>
    %41 = vector.extract_strided_slice %33 {offsets = [1, 0], sizes = [16, 128], strides = [1, 1]} : vector<18x128xf32> to vector<16x128xf32>
    %42 = arith.truncf %41 : vector<16x128xf32> to vector<16x128xbf16>
    %c1_24 = arith.constant 1 : index
    %c0_25 = arith.constant 0 : index
    %c0_26 = arith.constant 0 : index
    %43 = vector.load %arg5[%c1_24, %c0_25, %c0_26] : memref<3x128x128xbf16, #tpu.memory_space<vmem>>, vector<1x128x128xbf16>
    %44 = vector.shape_cast %43 : vector<1x128x128xbf16> to vector<128x128xbf16>
    %cst_27 = arith.constant dense<0.000000e+00> : vector<16x128xf32>
    %45 = tpu.matmul %42, %44, %cst_27 {dimension_numbers = #tpu.dot_dimension_numbers<[1], [0], [0], [1], [0, 0, 1, 1], [], []>} : vector<16x128xbf16>, vector<128x128xbf16>, vector<16x128xf32> -> vector<16x128xf32>
    %46 = arith.addf %40, %45 : vector<16x128xf32>
    %47 = vector.extract_strided_slice %33 {offsets = [2, 0], sizes = [16, 128], strides = [1, 1]} : vector<18x128xf32> to vector<16x128xf32>
    %48 = arith.truncf %47 : vector<16x128xf32> to vector<16x128xbf16>
    %c2_28 = arith.constant 2 : index
    %c0_29 = arith.constant 0 : index
    %c0_30 = arith.constant 0 : index
    %49 = vector.load %arg5[%c2_28, %c0_29, %c0_30] : memref<3x128x128xbf16, #tpu.memory_space<vmem>>, vector<1x128x128xbf16>
    %50 = vector.shape_cast %49 : vector<1x128x128xbf16> to vector<128x128xbf16>
    %cst_31 = arith.constant dense<0.000000e+00> : vector<16x128xf32>
    %51 = tpu.matmul %48, %50, %cst_31 {dimension_numbers = #tpu.dot_dimension_numbers<[1], [0], [0], [1], [0, 0, 1, 1], [], []>} : vector<16x128xbf16>, vector<128x128xbf16>, vector<16x128xf32> -> vector<16x128xf32>
    %52 = arith.addf %46, %51 : vector<16x128xf32>
    %c0_32 = arith.constant 0 : index
    %c0_33 = arith.constant 0 : index
    %53 = vector.load %arg6[%c0_32, %c0_33] : memref<1x128xf32, #tpu.memory_space<vmem>>, vector<1x128xf32>
    %54 = vector.broadcast %53 : vector<1x128xf32> to vector<16x128xf32>
    %55 = arith.mulf %52, %54 : vector<16x128xf32>
    %c0_34 = arith.constant 0 : index
    %c0_35 = arith.constant 0 : index
    %56 = vector.load %arg7[%c0_34, %c0_35] : memref<1x128xf32, #tpu.memory_space<vmem>>, vector<1x128xf32>
    %57 = vector.broadcast %56 : vector<1x128xf32> to vector<16x128xf32>
    %58 = arith.addf %55, %57 : vector<16x128xf32>
    %cst_36 = arith.constant 0.000000e+00 : f32
    %59 = vector.broadcast %cst_36 : f32 to vector<16x128xf32>
    %60 = arith.maximumf %58, %59 : vector<16x128xf32>
    %cst_37 = arith.constant 0.000000e+00 : f32
    %61 = vector.broadcast %cst_37 : f32 to vector<1x128xf32>
    %62 = tpu.concatenate %61, %60, %61 in 0 : vector<1x128xf32>, vector<16x128xf32>, vector<1x128xf32> -> vector<18x128xf32>
    %cst_38 = arith.constant 0.000000e+00 : f32
    %63 = vector.broadcast %cst_38 : f32 to vector<16x128xf32>
    %64 = vector.extract_strided_slice %62 {offsets = [0, 0], sizes = [16, 128], strides = [1, 1]} : vector<18x128xf32> to vector<16x128xf32>
    %65 = arith.truncf %64 : vector<16x128xf32> to vector<16x128xbf16>
    %c0_39 = arith.constant 0 : index
    %c0_40 = arith.constant 0 : index
    %c0_41 = arith.constant 0 : index
    %66 = vector.load %arg8[%c0_39, %c0_40, %c0_41] : memref<3x128x128xbf16, #tpu.memory_space<vmem>>, vector<1x128x128xbf16>
    %67 = vector.shape_cast %66 : vector<1x128x128xbf16> to vector<128x128xbf16>
    %cst_42 = arith.constant dense<0.000000e+00> : vector<16x128xf32>
    %68 = tpu.matmul %65, %67, %cst_42 {dimension_numbers = #tpu.dot_dimension_numbers<[1], [0], [0], [1], [0, 0, 1, 1], [], []>} : vector<16x128xbf16>, vector<128x128xbf16>, vector<16x128xf32> -> vector<16x128xf32>
    %69 = arith.addf %63, %68 : vector<16x128xf32>
    %70 = vector.extract_strided_slice %62 {offsets = [1, 0], sizes = [16, 128], strides = [1, 1]} : vector<18x128xf32> to vector<16x128xf32>
    %71 = arith.truncf %70 : vector<16x128xf32> to vector<16x128xbf16>
    %c1_43 = arith.constant 1 : index
    %c0_44 = arith.constant 0 : index
    %c0_45 = arith.constant 0 : index
    %72 = vector.load %arg8[%c1_43, %c0_44, %c0_45] : memref<3x128x128xbf16, #tpu.memory_space<vmem>>, vector<1x128x128xbf16>
    %73 = vector.shape_cast %72 : vector<1x128x128xbf16> to vector<128x128xbf16>
    %cst_46 = arith.constant dense<0.000000e+00> : vector<16x128xf32>
    %74 = tpu.matmul %71, %73, %cst_46 {dimension_numbers = #tpu.dot_dimension_numbers<[1], [0], [0], [1], [0, 0, 1, 1], [], []>} : vector<16x128xbf16>, vector<128x128xbf16>, vector<16x128xf32> -> vector<16x128xf32>
    %75 = arith.addf %69, %74 : vector<16x128xf32>
    %76 = vector.extract_strided_slice %62 {offsets = [2, 0], sizes = [16, 128], strides = [1, 1]} : vector<18x128xf32> to vector<16x128xf32>
    %77 = arith.truncf %76 : vector<16x128xf32> to vector<16x128xbf16>
    %c2_47 = arith.constant 2 : index
    %c0_48 = arith.constant 0 : index
    %c0_49 = arith.constant 0 : index
    %78 = vector.load %arg8[%c2_47, %c0_48, %c0_49] : memref<3x128x128xbf16, #tpu.memory_space<vmem>>, vector<1x128x128xbf16>
    %79 = vector.shape_cast %78 : vector<1x128x128xbf16> to vector<128x128xbf16>
    %cst_50 = arith.constant dense<0.000000e+00> : vector<16x128xf32>
    %80 = tpu.matmul %77, %79, %cst_50 {dimension_numbers = #tpu.dot_dimension_numbers<[1], [0], [0], [1], [0, 0, 1, 1], [], []>} : vector<16x128xbf16>, vector<128x128xbf16>, vector<16x128xf32> -> vector<16x128xf32>
    %81 = arith.addf %75, %80 : vector<16x128xf32>
    %c0_51 = arith.constant 0 : index
    %c0_52 = arith.constant 0 : index
    %82 = vector.load %arg9[%c0_51, %c0_52] : memref<1x128xf32, #tpu.memory_space<vmem>>, vector<1x128xf32>
    %83 = vector.broadcast %82 : vector<1x128xf32> to vector<16x128xf32>
    %84 = arith.mulf %81, %83 : vector<16x128xf32>
    %c0_53 = arith.constant 0 : index
    %c0_54 = arith.constant 0 : index
    %85 = vector.load %arg10[%c0_53, %c0_54] : memref<1x128xf32, #tpu.memory_space<vmem>>, vector<1x128xf32>
    %86 = vector.broadcast %85 : vector<1x128xf32> to vector<16x128xf32>
    %87 = arith.addf %84, %86 : vector<16x128xf32>
    %cst_55 = arith.constant 0.000000e+00 : f32
    %88 = vector.broadcast %cst_55 : f32 to vector<16x128xf32>
    %89 = arith.maximumf %87, %88 : vector<16x128xf32>
    %c0_56 = arith.constant 0 : index
    %c0_57 = arith.constant 0 : index
    %c0_58 = arith.constant 0 : index
    %90 = vector.load %arg11[%c0_56, %c0_57, %c0_58] : memref<1x16x128xf32, #tpu.memory_space<vmem>>, vector<1x16x128xf32>
    %91 = vector.shape_cast %90 : vector<1x16x128xf32> to vector<16x128xf32>
    %92 = vector.shape_cast %89 : vector<16x128xf32> to vector<1x16x128xf32>
    tpu.vector_store %arg11[%c0_56, %c0_57, %c0_58], %92 {strides = array<i32>} : memref<1x16x128xf32, #tpu.memory_space<vmem>>, vector<1x16x128xf32>,
    return
  }
  func.func @transform_0(%arg0: i32) -> (i32, i32, i32) {
    %c0_i32 = arith.constant 0 : i32
    %c0_i32_0 = arith.constant 0 : i32
    %c0_i32_1 = arith.constant 0 : i32
    return %arg0, %c0_i32, %c0_i32_0 : i32, i32, i32
  }
  func.func @transform_1(%arg0: i32) -> (i32, i32, i32) {
    %c0_i32 = arith.constant 0 : i32
    %c0_i32_0 = arith.constant 0 : i32
    %c0_i32_1 = arith.constant 0 : i32
    %c0_i32_2 = arith.constant 0 : i32
    return %c0_i32, %c0_i32_0, %c0_i32_1 : i32, i32, i32
  }
  func.func @transform_2(%arg0: i32) -> (i32, i32) {
    %c0_i32 = arith.constant 0 : i32
    %c0_i32_0 = arith.constant 0 : i32
    %c0_i32_1 = arith.constant 0 : i32
    return %c0_i32, %c0_i32_0 : i32, i32
  }
  func.func @transform_3(%arg0: i32) -> (i32, i32) {
    %c0_i32 = arith.constant 0 : i32
    %c0_i32_0 = arith.constant 0 : i32
    %c0_i32_1 = arith.constant 0 : i32
    return %c0_i32, %c0_i32_0 : i32, i32
  }
  func.func @transform_4(%arg0: i32) -> (i32, i32, i32) {
    %c0_i32 = arith.constant 0 : i32
    %c0_i32_0 = arith.constant 0 : i32
    %c0_i32_1 = arith.constant 0 : i32
    %c0_i32_2 = arith.constant 0 : i32
    return %c0_i32, %c0_i32_0, %c0_i32_1 : i32, i32, i32
  }
  func.func @transform_5(%arg0: i32) -> (i32, i32) {
    %c0_i32 = arith.constant 0 : i32
    %c0_i32_0 = arith.constant 0 : i32
    %c0_i32_1 = arith.constant 0 : i32
    return %c0_i32, %c0_i32_0 : i32, i32
  }
  func.func @transform_6(%arg0: i32) -> (i32, i32) {
    %c0_i32 = arith.constant 0 : i32
    %c0_i32_0 = arith.constant 0 : i32
    %c0_i32_1 = arith.constant 0 : i32
    return %c0_i32, %c0_i32_0 : i32, i32
  }
  func.func @transform_7(%arg0: i32) -> (i32, i32, i32) {
    %c0_i32 = arith.constant 0 : i32
    %c0_i32_0 = arith.constant 0 : i32
    %c0_i32_1 = arith.constant 0 : i32
    %c0_i32_2 = arith.constant 0 : i32
    return %c0_i32, %c0_i32_0, %c0_i32_1 : i32, i32, i32
  }
  func.func @transform_8(%arg0: i32) -> (i32, i32) {
    %c0_i32 = arith.constant 0 : i32
    %c0_i32_0 = arith.constant 0 : i32
    %c0_i32_1 = arith.constant 0 : i32
    return %c0_i32, %c0_i32_0 : i32, i32
  }
  func.func @transform_9(%arg0: i32) -> (i32, i32) {
    %c0_i32 = arith.constant 0 : i32
    %c0_i32_0 = arith.constant 0 : i32
    %c0_i32_1 = arith.constant 0 : i32
    return %c0_i32, %c0_i32_0 : i32, i32
  }
  func.func @transform_10(%arg0: i32) -> (i32, i32, i32) {
    %c0_i32 = arith.constant 0 : i32
    %c0_i32_0 = arith.constant 0 : i32
    %c0_i32_1 = arith.constant 0 : i32
    return %arg0, %c0_i32, %c0_i32_0 : i32, i32, i32
  }
}

</mosaic_0001>

<bundles_post_ra>
// kernel: tile.33
= control target key start
LH: loop header
LB: loop body
LE: loop exit
PB: predicated region body
PF: predicated region fallthrough
CT: control target
= control target key end

     0   :  { %s28_s0 = inlined_call_operand.vmem [shape: f32[8], index: 0, kind: input, shape index: {}]   ;;  %s29_s1 = inlined_call_operand.vmem [shape: f32[16,8], index: 1, kind: output, shape index: {}]  }
   0x1   :  { %v4_v0 = vld [vmem:[%s28_s0] ss:$0 sm:$0xff] }
   0x2   :  { %5 = vst [vmem:[%s29_s1] sm:$0xff] %v4_v0 }
   0x3   :  { %8 = vst [vmem:[%s29_s1 + $0x8] sm:$0xff] %v4_v0 }

// kernel: tile.34
= control target key start
LH: loop header
LB: loop body
LE: loop exit
PB: predicated region body
PF: predicated region fallthrough
CT: control target
= control target key end

     0   :  { %s131_s10 = smov 120   ;;  %s132_s11 = smov 104   ;;  %vm3_vm0 = vcmask 64512   ;;  %vm9_vm1 = vcmask 1048512   ;;  %vm15_vm2 = vcmask 982912   ;;  %vm21_vm3 = vcmask 917312   ;;  %s207_s0 = inlined_call_operand.vmem [shape: f32[16,8], index: 0, kind: input, shape index: {}]   ;;  %s208_s1 = inlined_call_operand.vmem [shape: f32[1,128], index: 1, kind: output, shape index: {}]  }
   0x1   :  { %v101_v0 = vld [vmem:[%s207_s0 + $0xf] sm:$0x1]   ;;  %v103_v1 = vld [vmem:[%s207_s0 + $0xd] sm:$0x1]   ;;  %v105_v2 = vld [vmem:[%s207_s0 + $0xb] sm:$0x1]  }
   0x2   :  { %7 = vrot.lane.b32.xlu0 %v101_v0, %s131_s10  ;;  %19 = vrot.lane.b32.xlu1 %v103_v1, %s132_s11  ;;  %s133_s14 = smov 88   ;;  %v102_v3 = vld [vmem:[%s207_s0 + $0xe] sm:$0x1]   ;;  %v104_v4 = vld [vmem:[%s207_s0 + $0xc] sm:$0x1]   ;;  %s134_s19 = smov 112  }
   0x3   :  { %31 = vrot.lane.b32.xlu2 %v105_v2, %s133_s14  ;;  %s135_s20 = smov 96   ;;  %v106_v5 = vld [vmem:[%s207_s0 + $0xa] sm:$0x1]   ;;  %s136_s23 = smov 80   ;;  %v107_v6 = vld [vmem:[%s207_s0 + $0x9] sm:$0x1]  }
   0x4   :  { %v108_v7 = vld [vmem:[%s207_s0 + $0x8] sm:$0x1]   ;;  %s137_s28 = smov 72   ;;  %s138_s29 = smov 64   ;;  %v109_v8 = vld [vmem:[%s207_s0 + $0x7] sm:$0x1]  }
   0x5   :  { %s139_s3 = smov 56   ;;  %v110_v9 = vld [vmem:[%s207_s0 + $0x6] sm:$0x1]   ;;  %v111_v10 = vld [vmem:[%s207_s0 + $0x5] sm:$0x1]   ;;  %s140_s8 = smov 48  }
   0x6   :  { %s141_s9 = smov 40   ;;  %v112_v11 = vld [vmem:[%s207_s0 + $0x4] sm:$0x1]   ;;  %s142_s12 = smov 32   ;;  %v113_v12 = vld [vmem:[%s207_s0 + $0x3] sm:$0x1]  }
   0x7   :  { %v114_v13 = vld [vmem:[%s207_s0 + $0x2] sm:$0x1]   ;;  %s143_s17 = smov 24   ;;  %s144_s18 = smov 16   ;;  %v115_v14 = vld [vmem:[%s207_s0 + $0x1] sm:$0x1]  }
   0x8   :  { %s145_s21 = smov 8   ;;  %v2_v15 = vld [vmem:[%s207_s0] sm:$0x1]   ;;  %vm27_vm4 = vcmask 851712   ;;  %vm33_vm5 = vcmask 786112   ;;  %vm39_vm6 = vcmask 720512  }
   0x9   :  { %4 = vst.msk [vmem:[#allocation0] sm:$0x1] %vm3_vm0, %v2_v15   ;;  %vm45_vm7 = vcmask 654912   ;;  %vm51_vm8 = vcmask 589312   ;;  %vm57_vm9 = vcmask 523712   ;;  %vm63_vm10 = vcmask 458112  }
   0xa   :  { %13 = vrot.lane.b32.xlu0 %v102_v3, %s134_s19  ;;  %25 = vrot.lane.b32.xlu1 %v104_v4, %s135_s20  ;;  %vm69_vm11 = vcmask 392512   ;;  %vm75_vm12 = vcmask 326912   ;;  %vm81_vm13 = vcmask 261312   ;;  %vm87_vm14 = vcmask 195712  }
   0xb   :  { %37 = vrot.lane.b32.xlu2 %v106_v5, %s136_s23  ;;  %vm93_vm15 = vcmask 130112  }
  0x12   :  { %43 = vrot.lane.b32.xlu0 %v107_v6, %s137_s28  ;;  %49 = vrot.lane.b32.xlu1 %v108_v7, %s138_s29 }
  0x13   :  { %55 = vrot.lane.b32.xlu2 %v109_v8, %s139_s3 }
  0x1a   :  { %61 = vrot.lane.b32.xlu0 %v110_v9, %s140_s8  ;;  %67 = vrot.lane.b32.xlu1 %v111_v10, %s141_s9 }
  0x1b   :  { %73 = vrot.lane.b32.xlu2 %v112_v11, %s142_s12 }
  0x22   :  { %79 = vrot.lane.b32.xlu0 %v113_v12, %s143_s17  ;;  %85 = vrot.lane.b32.xlu1 %v114_v13, %s144_s18 }
  0x23   :  { %91 = vrot.lane.b32.xlu2 %v115_v14, %s145_s21 }
  0x5d   :  { %v32_v16 = vpop.permute.xlu2 %31  }
  0x65   :  { %v38_v17 = vpop.permute.xlu2 %37  }
  0x6d   :  { %v56_v18 = vpop.permute.xlu2 %55  }
  0x74   :  { %v8_v19 = vpop.permute.xlu0 %7   ;;  %v20_v20 = vpop.permute.xlu1 %19  }
  0x75   :  { %10 = vst.msk [vmem:[#allocation0] sm:$0x1] %vm9_vm1, %v8_v19   ;;  %v74_v21 = vpop.permute.xlu2 %73  }
  0x7c   :  { %v14_v22 = vpop.permute.xlu0 %13   ;;  %v26_v23 = vpop.permute.xlu1 %25  }
  0x7d   :  { %16 = vst.msk [vmem:[#allocation0] sm:$0x1] %vm15_vm2, %v14_v22   ;;  %v92_v24 = vpop.permute.xlu2 %91  }
  0x7e   :  { %22 = vst.msk [vmem:[#allocation0] sm:$0x1] %vm21_vm3, %v20_v20  }
  0x7f   :  { %28 = vst.msk [vmem:[#allocation0] sm:$0x1] %vm27_vm4, %v26_v23  }
  0x80   :  { %34 = vst.msk [vmem:[#allocation0] sm:$0x1] %vm33_vm5, %v32_v16  }
  0x81   :  { %40 = vst.msk [vmem:[#allocation0] sm:$0x1] %vm39_vm6, %v38_v17  }
  0x84   :  { %v44_v25 = vpop.permute.xlu0 %43   ;;  %v50_v26 = vpop.permute.xlu1 %49  }
  0x85   :  { %46 = vst.msk [vmem:[#allocation0] sm:$0x1] %vm45_vm7, %v44_v25  }
  0x86   :  { %52 = vst.msk [vmem:[#allocation0] sm:$0x1] %vm51_vm8, %v50_v26  }
  0x87   :  { %58 = vst.msk [vmem:[#allocation0] sm:$0x1] %vm57_vm9, %v56_v18  }
  0x8c   :  { %v62_v27 = vpop.permute.xlu0 %61   ;;  %v68_v28 = vpop.permute.xlu1 %67  }
  0x8d   :  { %64 = vst.msk [vmem:[#allocation0] sm:$0x1] %vm63_vm10, %v62_v27  }
  0x8e   :  { %70 = vst.msk [vmem:[#allocation0] sm:$0x1] %vm69_vm11, %v68_v28  }
  0x8f   :  { %76 = vst.msk [vmem:[#allocation0] sm:$0x1] %vm75_vm12, %v74_v21  }
  0x94   :  { %v80_v29 = vpop.permute.xlu0 %79   ;;  %v86_v30 = vpop.permute.xlu1 %85  }
  0x95   :  { %82 = vst.msk [vmem:[#allocation0] sm:$0x1] %vm81_vm13, %v80_v29  }
  0x96   :  { %88 = vst.msk [vmem:[#allocation0] sm:$0x1] %vm87_vm14, %v86_v30  }
  0x97   :  { %94 = vst.msk [vmem:[#allocation0] sm:$0x1] %vm93_vm15, %v92_v24  }
  0x9e   :  { %v97_v31 = vld [vmem:[#allocation0] sm:$0x1] }
  0x9f   :  { %100 = vst [vmem:[%s208_s1] sm:$0x1] %v97_v31 }

// kernel: create_deconv_3_in_forward.1
= control target key start
LH: loop header
LB: loop body
LE: loop exit
PB: predicated region body
PF: predicated region fallthrough
CT: control target
= control target key end

     0   :  { %s1672_s13 = smov 0   ;;  %s1915_s0 = inlined_call_operand.vmem [shape: bf16[2,16,64], index: 0, kind: input, shape index: {}]   ;;  %s1916_s1 = inlined_call_operand.vmem [shape: bf16[3,64,128], index: 1, kind: input, shape index: {}]   ;;  %s1917_s2 = inlined_call_operand.vmem [shape: f32[1,128], index: 2, kind: input, shape index: {}]   ;;  %s1918_s3 = inlined_call_operand.vmem [shape: f32[1,128], index: 3, kind: input, shape index: {}]   ;;  %s1919_s4 = inlined_call_operand.vmem [shape: bf16[3,128,128], index: 4, kind: input, shape index: {}]   ;;  %s1920_s5 = inlined_call_operand.vmem [shape: f32[1,128], index: 5, kind: input, shape index: {}]   ;;  %s1921_s6 = inlined_call_operand.vmem [shape: f32[1,128], index: 6, kind: input, shape index: {}]   ;;  %s1922_s7 = inlined_call_operand.vmem [shape: bf16[3,128,128], index: 7, kind: input, shape index: {}]   ;;  %s1923_s8 = inlined_call_operand.vmem [shape: f32[1,128], index: 8, kind: input, shape index: {}]   ;;  %s1924_s9 = inlined_call_operand.vmem [shape: f32[1,128], index: 9, kind: input, shape index: {}]   ;;  %s1925_s10 = inlined_call_operand.vmem [shape: f32[2,16,128], index: 10, kind: output, shape index: {}]  }
   0x1 LB: > { %s1185_s14 = sadd.s32 4294967295, %s1614_s13   ;;  %p1189_p0 = scmp.ge.s32.totalorder %s1614_s13, 1  ;;  %s1614_s13 = sphi %s1672_s13, %s20_s13  }
   0x2   : > { %p312_p1 = scmp.lt.s32.totalorder %s1614_s13, 3 }
   0x4   : > { %p313_p2 = pnand %p1189_p0, %p312_p1 }
   0x5   : > { %p350_p3 = scmp.lt.s32.totalorder (!%p313_p2), %s1185_s14, 1 }
   0x6   : > { %316 = sbr.rel (%p313_p2) target bundleno = 514 (0x202), region = 60 }
   0xb   : > { %v1536_v0 = vld [vmem:[%s1916_s1 + $0x38] sm:$0xff]  ;;  %v1535_v2 = vld [vmem:[%s1916_s1 + $0x30] sm:$0xff]  ;;  %s1929_s14 = smov (!%p350_p3, %s1185_s14), 1  ;;  %v1534_v4 = vld [vmem:[%s1916_s1 + $0x28] sm:$0xff]  ;;  %vm367_vm0 = vcmask 1040384   ;;  %vm501_vm1 = vcmask 1046528  }
   0xc   : > { %v1540_v1 = vld [vmem:[%s1916_s1 + $0x58] sm:$0xff]  ;;  %440 = vmatpush.bf16.msra.mxu1 %v1536_v0  ;;  %v1539_v3 = vld [vmem:[%s1916_s1 + $0x50] sm:$0xff]  ;;  %s1527_s25 = sshll.u32 %s1929_s14, 3  ;;  %v1538_v5 = vld [vmem:[%s1916_s1 + $0x48] sm:$0xff]  ;;  %vm395_vm2 = vsmask.f32 7424 }
   0xd   : > { %536 = vmatpush.bf16.msra.mxu2 %v1540_v1  ;;  %s354_s28 = scalar_lea.vmem %s1915_s0, %s1527_s25  ;;  %v1533_v11 = vld [vmem:[%s1916_s1 + $0x20] sm:$0xff]  ;;  %v1532_v16 = vld [vmem:[%s1916_s1 + $0x18] sm:$0xff]  ;;  %v1531_v23 = vld [vmem:[%s1916_s1 + $0x10] sm:$0xff]  ;;  %vm432_vm3 = vcmask 523264   ;;  %vm1616_vm5 = vmmov 1   ;;  %s1528_s25 = sshll.u32 %s1929_s14, 4 }
   0xe   : > { %v1590_v6 = vld [vmem:[%s354_s28] sm:$0xff]   ;;  %v1530_v29 = vld [vmem:[%s1916_s1 + $0x8] sm:$0xff]  ;;  %v1548_v32 = vld [vmem:[%s1919_s4 + $0x38] sm:$0xff]  ;;  %s359_s28 = scalar_lea.vmem %s1925_s10, %s1528_s25 }
   0xf   : > { %v1591_v7 = vunpack.c.l.bf16 %v1590_v6  ;;  %v1592_v8 = vunpack.c.h.bf16 %v1590_v6  ;;  %v1537_v12 = vld [vmem:[%s1916_s1 + $0x40] sm:$0xff]  ;;  %v1564_v33 = vld [vmem:[%s1919_s4 + $0xb8] sm:$0xff]  ;;  %730 = vmatpush.bf16.msra.mxu0 %v1548_v32  ;;  %v1547_v34 = vld [vmem:[%s1919_s4 + $0x30] sm:$0xff] }
  0x10   : > { %441 = vmatpush.bf16.msra.mxu1 %v1535_v2  ;;  %v1529_v31 = vld [vmem:[%s1916_s1] sm:$0xff]  ;;  %v1556_v35 = vld [vmem:[%s1919_s4 + $0x78] sm:$0xff]  ;;  %v1563_v36 = vld [vmem:[%s1919_s4 + $0xb0] sm:$0xff] }
  0x11   : > { %537 = vmatpush.bf16.msra.mxu2 %v1539_v3  ;;  %v368_v9 = vrot.slane %v1591_v7, 7  ;;  %v369_v10 = vrot.slane %v1592_v8, 7  ;;  %v1546_v37 = vld [vmem:[%s1919_s4 + $0x28] sm:$0xff]  ;;  %668 = vmatpush.bf16.msra.mxu3 %v1556_v35  ;;  %v1555_v38 = vld [vmem:[%s1919_s4 + $0x70] sm:$0xff]  ;;  %v1545_v40 = vld [vmem:[%s1919_s4 + $0x20] sm:$0xff] }
  0x12   : > { %v1562_v39 = vld [vmem:[%s1919_s4 + $0xa8] sm:$0xff]  ;;  %v1561_v42 = vld [vmem:[%s1919_s4 + $0xa0] sm:$0xff]  ;;  %v1544_v43 = vld [vmem:[%s1919_s4 + $0x18] sm:$0xff] }
  0x13   : > { %v370_v13 = vsel %vm367_vm0, %v368_v9, %v369_v10  ;;  %v374_v14 = vsel %vm367_vm0, 0.0, %v368_v9  ;;  %v375_v15 = vsel %vm367_vm0, %v369_v10, 0.0  ;;  %731 = vmatpush.bf16.msra.mxu0 %v1547_v34  ;;  %v1554_v41 = vld [vmem:[%s1919_s4 + $0x68] sm:$0xff]  ;;  %v1553_v44 = vld [vmem:[%s1919_s4 + $0x60] sm:$0xff]  ;;  %v1560_v45 = vld [vmem:[%s1919_s4 + $0x98] sm:$0xff] }
  0x14   : > { %442 = vmatpush.bf16.msra.mxu1 %v1534_v4  ;;  %v376_v17 = vpack.c.bf16 %v370_v13, %v374_v14  ;;  %v385_v18 = vpack.c.bf16 %v375_v15, %v375_v15  ;;  %v1543_v46 = vld [vmem:[%s1919_s4 + $0x10] sm:$0xff]  ;;  %v1552_v47 = vld [vmem:[%s1919_s4 + $0x58] sm:$0xff]  ;;  %v1542_v49 = vld [vmem:[%s1919_s4 + $0x8] sm:$0xff] }
  0x15   : > { %538 = vmatpush.bf16.msra.mxu2 %v1538_v5  ;;  %669 = vmatpush.bf16.msra.mxu3 %v1555_v38  ;;  %v1559_v48 = vld [vmem:[%s1919_s4 + $0x90] sm:$0xff]  ;;  %v1558_v52 = vld [vmem:[%s1919_s4 + $0x88] sm:$0xff]  ;;  %v1541_v53 = vld [vmem:[%s1919_s4] sm:$0xff] }
  0x16   : > { %v397_v19 = vshrl.u32 %v376_v17, 16  ;;  %v399_v20 = vshll.u32 %v376_v17, 16  ;;  %v404_v21 = vshll.u32 %v385_v18, 16  ;;  %v502_v22 = vrot.slane %v376_v17, 1  ;;  %v1551_v51 = vld [vmem:[%s1919_s4 + $0x50] sm:$0xff]  ;;  %v1550_v54 = vld [vmem:[%s1919_s4 + $0x48] sm:$0xff]  ;;  %vm1341_vm4 = vmneg %vm367_vm0 }
  0x17   : > { %v503_v24 = vrot.slane %v385_v18, 1  ;;  %732 = vmatpush.bf16.msra.mxu0 %v1546_v37  ;;  %v1557_v55 = vld [vmem:[%s1919_s4 + $0x80] sm:$0xff]  ;;  %vm1809_vm6 = vmpackc.low %vm1616_vm5, %vm1341_vm4  ;;  %v1580_v32 = vld [vmem:[%s1922_s7 + $0x78] sm:$0xff] }
  0x18   : > { %443 = vmatpush.bf16.msra.mxu1 %v1533_v11  ;;  %v401_v25 = vrot.slane %v399_v20, 1  ;;  %v406_v26 = vrot.slane %v404_v21, 1  ;;  %v1549_v57 = vld [vmem:[%s1919_s4 + $0x40] sm:$0xff]  ;;  %v1570_v34 = vld [vmem:[%s1922_s7 + $0x28] sm:$0xff]  ;;  %v1579_v35 = vld [vmem:[%s1922_s7 + $0x70] sm:$0xff] }
  0x19   : > { %539 = vmatpush.bf16.msra.mxu2 %v1537_v12  ;;  %v504_v27 = vsel %vm501_vm1, %v502_v22, %v503_v24  ;;  %670 = vmatpush.bf16.msra.mxu3 %v1554_v41  ;;  %v1602_v61 = vld [vmem:[%s1917_s2] ss:$0 sm:$0xff]  ;;  %v1578_v38 = vld [vmem:[%s1922_s7 + $0x68] sm:$0xff] }
  0x1a   : > { %v402_v28 = vor.u32 %v401_v25, %v397_v19  ;;  %v1603_v0 = vld [vmem:[%s1918_s3] ss:$0 sm:$0xff] }
  0x1b   : > { %733 = vmatpush.bf16.msra.mxu0 %v1545_v40  ;;  %v1569_v37 = vld [vmem:[%s1922_s7 + $0x20] sm:$0xff]  ;;  %v1568_v40 = vld [vmem:[%s1922_s7 + $0x18] sm:$0xff] }
  0x1c   : > { %480 = vmatpush.bf16.msrb.mxu1 %v1532_v16  ;;  %1260 = vmatmul.msk.bf16.vlgmr.msra.gmra.mxu2 %vm432_vm3, %v504_v27  ;;  %v407_v30 = vsel %vm395_vm2, %v402_v28, %v406_v26  ;;  %v1577_v41 = vld [vmem:[%s1922_s7 + $0x60] sm:$0xff] }
  0x1d   : > { %1218 = vmatmul.msk.bf16.vlgmr.msra.gmra.mxu1 %vm432_vm3, %v407_v30  ;;  %671 = vmatpush.bf16.msra.mxu3 %v1553_v44  ;;  %v1588_v30 = vld [vmem:[%s1922_s7 + $0xb8] sm:$0xff] }
  0x1e   : > { %951 = vmatpush.bf16.msrb.mxu2 %v1580_v32  ;;  %v1576_v44 = vld [vmem:[%s1922_s7 + $0x58] sm:$0xff] }
  0x1f   : > { %734 = vmatpush.bf16.msra.mxu0 %v1544_v43  ;;  %v1567_v43 = vld [vmem:[%s1922_s7 + $0x10] sm:$0xff] }
  0x20   : > { %481 = vmatpush.bf16.msrb.mxu1 %v1531_v23 }
  0x21   : > { %672 = vmatpush.bf16.msra.mxu3 %v1552_v47  ;;  %v1575_v47 = vld [vmem:[%s1922_s7 + $0x50] sm:$0xff] }
  0x22   : > { %952 = vmatpush.bf16.msrb.mxu2 %v1579_v35 }
  0x23   : > { %735 = vmatpush.bf16.msra.mxu0 %v1543_v46  ;;  %v1566_v46 = vld [vmem:[%s1922_s7 + $0x8] sm:$0xff] }
  0x24   : > { %482 = vmatpush.bf16.msrb.mxu1 %v1530_v29  ;;  %v1572_v29 = vld [vmem:[%s1922_s7 + $0x38] sm:$0xff] }
  0x25   : > { %673 = vmatpush.bf16.msra.mxu3 %v1551_v51  ;;  %v1581_v51 = vld [vmem:[%s1922_s7 + $0x80] sm:$0xff] }
  0x26   : > { %953 = vmatpush.bf16.msrb.mxu2 %v1578_v38 }
  0x27   : > { %736 = vmatpush.bf16.msra.mxu0 %v1542_v49  ;;  %v1565_v49 = vld [vmem:[%s1922_s7] sm:$0xff] }
  0x28   : > { %483 = vmatpush.bf16.msrb.mxu1 %v1529_v31  ;;  %v1571_v31 = vld [vmem:[%s1922_s7 + $0x30] sm:$0xff] }
  0x29   : > { %674 = vmatpush.bf16.msra.mxu3 %v1550_v54 }
  0x2a   : > { %954 = vmatpush.bf16.msrb.mxu2 %v1577_v41 }
  0x2b   : > { %737 = vmatpush.bf16.msra.mxu0 %v1541_v53 }
  0x2c   : > { %815 = vmatpush.bf16.msra.mxu1 %v1564_v33  ;;  %v1587_v33 = vld [vmem:[%s1922_s7 + $0xb0] sm:$0xff] }
  0x2d   : > { %1235 = vmatmul.msk.bf16.vlgmr.msrb.gmra.mxu1 %vm432_vm3, %v376_v17  ;;  %675 = vmatpush.bf16.msra.mxu3 %v1549_v57  ;;  %v1604_v57 = vld [vmem:[%s1920_s5] ss:$0 sm:$0xff] }
  0x2e   : > { %955 = vmatpush.bf16.msrb.mxu2 %v1576_v44 }
  0x2f   : > { %1098 = vmatpush.bf16.msrb.mxu0 %v1588_v30 }
  0x30   : > { %816 = vmatpush.bf16.msra.mxu1 %v1563_v36  ;;  %v1586_v36 = vld [vmem:[%s1922_s7 + $0xa8] sm:$0xff] }
  0x31   : > { %1013 = vmatpush.bf16.msrb.mxu3 %v1572_v29  ;;  %v1606_v29 = vld [vmem:[%s1923_s8] ss:$0 sm:$0xff] }
  0x32   : > { %956 = vmatpush.bf16.msrb.mxu2 %v1575_v47 }
  0x33   : > { %1099 = vmatpush.bf16.msrb.mxu0 %v1587_v33 }
  0x34   : > { %817 = vmatpush.bf16.msra.mxu1 %v1562_v39  ;;  %v1585_v39 = vld [vmem:[%s1922_s7 + $0xa0] sm:$0xff] }
  0x35   : > { %1014 = vmatpush.bf16.msrb.mxu3 %v1571_v31  ;;  %v1607_v31 = vld [vmem:[%s1924_s9] ss:$0 sm:$0xff] }
  0x37   : > { %1100 = vmatpush.bf16.msrb.mxu0 %v1586_v36 }
  0x38   : > { %818 = vmatpush.bf16.msra.mxu1 %v1561_v42  ;;  %v1584_v42 = vld [vmem:[%s1922_s7 + $0x98] sm:$0xff] }
  0x39   : > { %1015 = vmatpush.bf16.msrb.mxu3 %v1570_v34 }
  0x3b   : > { %1101 = vmatpush.bf16.msrb.mxu0 %v1585_v39 }
  0x3c   : > { %819 = vmatpush.bf16.msra.mxu1 %v1560_v45  ;;  %v1583_v45 = vld [vmem:[%s1922_s7 + $0x90] sm:$0xff] }
  0x3d   : > { %1016 = vmatpush.bf16.msrb.mxu3 %v1569_v37 }
  0x3f   : > { %1102 = vmatpush.bf16.msrb.mxu0 %v1584_v42 }
  0x40   : > { %820 = vmatpush.bf16.msra.mxu1 %v1559_v48  ;;  %v1582_v48 = vld [vmem:[%s1922_s7 + $0x88] sm:$0xff] }
  0x41   : > { %1017 = vmatpush.bf16.msrb.mxu3 %v1568_v40 }
  0x43   : > { %1103 = vmatpush.bf16.msrb.mxu0 %v1583_v45 }
  0x44   : > { %821 = vmatpush.bf16.msra.mxu1 %v1558_v52  ;;  %v1573_v52 = vld [vmem:[%s1922_s7 + $0x40] sm:$0xff] }
  0x45   : > { %1018 = vmatpush.bf16.msrb.mxu3 %v1567_v43 }
  0x47   : > { %1104 = vmatpush.bf16.msrb.mxu0 %v1582_v48 }
  0x48   : > { %822 = vmatpush.bf16.msra.mxu1 %v1557_v55 }
  0x49   : > { %1019 = vmatpush.bf16.msrb.mxu3 %v1566_v46 }
  0x4b   : > { %1105 = vmatpush.bf16.msrb.mxu0 %v1581_v51 }
  0x4d   : > { %1020 = vmatpush.bf16.msrb.mxu3 %v1565_v49 }
  0x9a   : > { %v445_v50 = vpop.f32.mrf.mxu1 }
  0x9f   : > { %v541_v58 = vpop.f32.mrf.mxu2 }
  0xa2   : > { %v447_v56 = vpop.f32.mrf.mxu1 }
  0xa7   : > { %v543_v4 = vpop.f32.mrf.mxu2 }
  0xaa   : > { %v485_v59 = vpop.f32.mrf.mxu1 }
  0xab   : > { %v486_v60 = vadd.f32 %v485_v59, %v445_v50  ;;  %v1574_v50 = vld [vmem:[%s1922_s7 + $0x48] sm:$0xff] }
  0xac   : > { %957 = vmatpush.bf16.msrb.mxu2 %v1574_v50 }
  0xad   : > { %v546_v62 = vadd.f32 %v541_v58, %v486_v60  ;;  %v1605_v60 = vld [vmem:[%s1921_s6] ss:$0 sm:$0xff] }
  0xaf   : > { %v552_v63 = vmul.f32 %v1602_v61, %v546_v62 }
  0xb0   : > { %958 = vmatpush.bf16.msrb.mxu2 %v1573_v52 }
  0xb1   : > { %v558_v2 = vadd.f32 %v1603_v0, %v552_v63 }
  0xb2   : > { %v487_v1 = vpop.f32.mrf.mxu1 }
  0xb3   : > { %v488_v3 = vadd.f32 %v487_v1, %v447_v56  ;;  %v560_v6 = vmax.f32 %v558_v2, 0.0 }
  0xb5   : > { %v547_v5 = vadd.f32 %v543_v4, %v488_v3  ;;  %v564_v9 = vrot.slane %v560_v6, 7 }
  0xb7   : > { %v553_v7 = vmul.f32 %v1602_v61, %v547_v5  ;;  %v570_v14 = vsel %vm367_vm0, 0.0, %v564_v9 }
  0xb9   : > { %v559_v8 = vadd.f32 %v1603_v0, %v553_v7 }
  0xbb   : > { %v561_v10 = vmax.f32 %v559_v8, 0.0 }
  0xbd   : > { %v565_v11 = vrot.slane %v561_v10, 7 }
  0xbf   : > { %v571_v12 = vsel %vm367_vm0, %v565_v11, 0.0  ;;  %v566_v13 = vsel %vm367_vm0, %v564_v9, %v565_v11 }
  0xc0   : > { %v589_v16 = vpack.c.bf16 %v571_v12, %v571_v12  ;;  %v572_v17 = vpack.c.bf16 %v566_v13, %v570_v14  ;;  %v1343_v18 = vpack.c.bf16 %v566_v13, %v564_v9 }
  0xc2   : > { %1344 = vmatmul.msk.bf16.vlgmr.msra.gmra.mxu0 %vm1809_vm6, %v1343_v18  ;;  %v763_v19 = vrot.slane %v572_v17, 1  ;;  %v764_v20 = vrot.slane %v589_v16, 1  ;;  %v610_v21 = vshll.u32 %v572_v17, 16  ;;  %v615_v22 = vshll.u32 %v589_v16, 16 }
  0xc3   : > { %v608_v24 = vshrl.u32 %v572_v17, 16 }
  0xc4   : > { %v765_v23 = vsel %vm501_vm1, %v763_v19, %v764_v20  ;;  %v612_v25 = vrot.slane %v610_v21, 1  ;;  %v617_v27 = vrot.slane %v615_v22, 1 }
  0xc5   : > { %823 = vmatmul.bf16.vlgmr.msra.gmra.mxu1 %v765_v23 }
  0xc6   : > { %v613_v26 = vor.u32 %v612_v25, %v608_v24 }
  0xc8   : > { %v618_v28 = vsel %vm395_vm2, %v613_v26, %v617_v27 }
  0xc9   : > { %676 = vmatmul.bf16.vlgmr.msra.gmra.mxu3 %v618_v28 }
 0x13f   : > { %v739_v53 = vpop.f32.mrf.mxu0 }
 0x142   : > { %v824_v54 = vpop.f32.mrf.mxu1 }
 0x147   : > { %v741_v61 = vpop.f32.mrf.mxu0 }
 0x14a   : > { %v826_v1 = vpop.f32.mrf.mxu1 }
 0x14c   : > { %v677_v55 = vpop.f32.mrf.mxu3 }
 0x14d   : > { %v740_v56 = vadd.f32 %v739_v53, %v677_v55 }
 0x14f   : > { %v829_v58 = vadd.f32 %v824_v54, %v740_v56 }
 0x151   : > { %v835_v59 = vmul.f32 %v1604_v57, %v829_v58 }
 0x153   : > { %v841_v63 = vadd.f32 %v1605_v60, %v835_v59 }
 0x154   : > { %v679_v62 = vpop.f32.mrf.mxu3 }
 0x155   : > { %v742_v0 = vadd.f32 %v741_v61, %v679_v62  ;;  %v843_v3 = vmax.f32 %v841_v63, 0.0 }
 0x157   : > { %v830_v2 = vadd.f32 %v826_v1, %v742_v0  ;;  %v847_v6 = vrot.slane %v843_v3, 7 }
 0x159   : > { %v836_v4 = vmul.f32 %v1604_v57, %v830_v2  ;;  %v853_v10 = vsel %vm367_vm0, 0.0, %v847_v6 }
 0x15b   : > { %v842_v5 = vadd.f32 %v1605_v60, %v836_v4 }
 0x15d   : > { %v844_v7 = vmax.f32 %v842_v5, 0.0 }
 0x15f   : > { %v848_v8 = vrot.slane %v844_v7, 7 }
 0x161   : > { %v849_v9 = vsel %vm367_vm0, %v847_v6, %v848_v8  ;;  %v854_v11 = vsel %vm367_vm0, %v848_v8, 0.0 }
 0x162   : > { %v855_v12 = vpack.c.bf16 %v849_v9, %v853_v10  ;;  %v1475_v13 = vpack.c.bf16 %v849_v9, %v847_v6  ;;  %v872_v14 = vpack.c.bf16 %v854_v11, %v854_v11 }
 0x164   : > { %1476 = vmatmul.msk.bf16.vlgmr.msrb.gmra.mxu3 %vm1809_vm6, %v1475_v13  ;;  %v1046_v16 = vrot.slane %v855_v12, 1  ;;  %v1047_v17 = vrot.slane %v872_v14, 1  ;;  %v893_v18 = vshll.u32 %v855_v12, 16  ;;  %v898_v19 = vshll.u32 %v872_v14, 16 }
 0x165   : > { %v891_v21 = vshrl.u32 %v855_v12, 16 }
 0x166   : > { %v1048_v20 = vsel %vm501_vm1, %v1046_v16, %v1047_v17  ;;  %v895_v22 = vrot.slane %v893_v18, 1  ;;  %v900_v24 = vrot.slane %v898_v19, 1 }
 0x167   : > { %1106 = vmatmul.bf16.vlgmr.msrb.gmra.mxu0 %v1048_v20 }
 0x168   : > { %v896_v23 = vor.u32 %v895_v22, %v891_v21 }
 0x16a   : > { %v901_v25 = vsel %vm395_vm2, %v896_v23, %v900_v24 }
 0x16b   : > { %959 = vmatmul.bf16.vlgmr.msrb.gmra.mxu2 %v901_v25 }
 0x1e4   : > { %v1107_v27 = vpop.f32.mrf.mxu0 }
 0x1e7   : > { %v1022_v26 = vpop.f32.mrf.mxu3 }
 0x1ec   : > { %v1109_v38 = vpop.f32.mrf.mxu0 }
 0x1ee   : > { %v960_v28 = vpop.f32.mrf.mxu2 }
 0x1ef   : > { %v1023_v15 = vadd.f32 %v1022_v26, %v960_v28  ;;  %v1024_v34 = vpop.f32.mrf.mxu3 }
 0x1f1   : > { %v1112_v30 = vadd.f32 %v1107_v27, %v1023_v15 }
 0x1f3   : > { %v1118_v32 = vmul.f32 %v1606_v29, %v1112_v30 }
 0x1f5   : > { %v1124_v33 = vadd.f32 %v1607_v31, %v1118_v32 }
 0x1f6   : > { %v962_v35 = vpop.f32.mrf.mxu2 }
 0x1f7   : > { %v1126_v36 = vmax.f32 %v1124_v33, 0.0  ;;  %v1025_v37 = vadd.f32 %v1024_v34, %v962_v35 }
 0x1f9   : > { %1128 = vst [vmem:[%s359_s28] sm:$0xff] %v1126_v36  ;;  %v1113_v39 = vadd.f32 %v1109_v38, %v1025_v37 }
 0x1fb   : > { %v1119_v40 = vmul.f32 %v1606_v29, %v1113_v39 }
 0x1fd   : > { %v1125_v41 = vadd.f32 %v1607_v31, %v1119_v40 }
 0x1ff   : > { %v1127_v42 = vmax.f32 %v1125_v41, 0.0 }
 0x201   : > { %1129 = vst [vmem:[%s359_s28 + $0x8] sm:$0xff] %v1127_v42 }
 0x202 PF: > { %s20_s13 = sadd.s32 1, %s1614_s13  }
 0x203   : > { %p17_p4 = scmp.ge.s32.totalorder %s20_s13, 4  }
 0x205   :  { %19 = sbr.rel (!%p17_p4) target bundleno = 1 (0x1), region = 96 }

</bundles_post_ra>
